<compile_context>
chip_gen: v7x
topology: tpu7x:2x2x1
jax: 0.10.0
libtpu: 0.0.40
codegen_flags: <defaults>
</compile_context>

<pallas_src>
import math
import jax
import jax.numpy as jnp
from jax.experimental import pallas as pl
from jax.experimental.pallas import tpu as pltpu

# ---- FunNet / SirenNet hyper-parameters (consistent with the PyTorch __init__) ----
N_DIM = 3          # number of independent SirenNets (one per input dim)
NUM_LAYERS = 3     # number of Siren "hidden" layers (incl. the first layer)
DIM_HIDDEN = 32
DIM_OUT = 4
W0 = 10.0          # w0 for non-first layers (FunNet passes w0=10)
W0_INITIAL = 10.0  # w0 for the first layer (FunNet passes w0_initial=10)
C_SIREN = 6.0      # SIREN init constant c
BATCH = 8

_L1 = NUM_LAYERS - 1          # hidden Siren layers after the first (= 2)
_NH = N_DIM * DIM_HIDDEN      # 96  (all nets' hidden states concatenated on lanes)
_ND = N_DIM * DIM_OUT         # 12  (all nets' outputs concatenated on lanes)


def funnet_kernel(xr_ref, w_ref, v_ref, out_ref):
    """Single-invocation FunNet forward.

    xr_ref : (B, N*H)        x with each column repeated DIM_HIDDEN times
    w_ref  : (L1+1, N*H, N*H) block-diag hidden weights; last slice = zero-padded
                              block-diag final-layer weights
    v_ref  : (L1+3, 1, N*H)  [w_first, b_first, b_hidden_0..L1-1, b_last(padded)]
    out_ref: (B, 1)
    """
    # First Siren layer (dim_in = 1, purely elementwise): sin(w0_init*(x*W + b)).
    h = jnp.sin(W0_INITIAL * (xr_ref[...] * v_ref[0] + v_ref[1]))            # (B, N*H)

    # Remaining hidden Siren layers: all N_DIM nets fused into one block-diagonal
    # MXU matmul per layer (static unrolled loop, single kernel invocation).
    for l in range(_L1):
        z = jnp.dot(h, w_ref[l], preferred_element_type=jnp.float32)         # (B, N*H)
        h = jnp.sin(W0 * (z + v_ref[2 + l]))

    # Final linear layer (identity activation), block-diag, zero-padded to N*H lanes.
    o = jnp.dot(h, w_ref[_L1], preferred_element_type=jnp.float32) + v_ref[2 + _L1]

    # Multip: elementwise product over the N_DIM per-net output chunks (kept in
    # vregs), then sum over dim_out (dim=1, keepdim=True).
    prod = o[:, 0:DIM_OUT]
    for n in range(1, N_DIM):
        prod = prod * o[:, n * DIM_OUT:(n + 1) * DIM_OUT]
    out_ref[...] = jnp.sum(prod, axis=1, keepdims=True)                      # (B, 1)


def _block_diag(mats):
    """Stack a list of equally-shaped 2-D matrices into a block-diagonal matrix."""
    n = len(mats)
    r, c = mats[0].shape
    out = jnp.zeros((n * r, n * c), mats[0].dtype)
    for i, m in enumerate(mats):
        out = out.at[i * r:(i + 1) * r, i * c:(i + 1) * c].set(m)
    return out


def pack_params(params):
    """One-time host-side packing of the per-net parameter stacks into 2 arrays."""
    wf, bf, wh, bh, wl, bl = params

    # --- vector stack: first-layer weight/bias, hidden biases, padded final bias ---
    wf_flat = wf.reshape(1, _NH)                                        # (1, N*H)
    bf_flat = bf.reshape(1, _NH)                                        # (1, N*H)
    bh_flat = jnp.transpose(bh, (1, 2, 0, 3)).reshape(_L1, _NH)         # (L1, N*H)
    bl_pad = jnp.zeros((1, _NH), jnp.float32).at[0, :_ND].set(bl.reshape(_ND))
    v_stack = jnp.concatenate([wf_flat, bf_flat, bh_flat, bl_pad], axis=0)
    v_stack = v_stack.reshape(_L1 + 3, 1, _NH)                          # (L1+3, 1, N*H)

    # --- weight stack: block-diag hidden layers + zero-padded block-diag last layer ---
    w_list = [_block_diag([wh[n, l] for n in range(N_DIM)]) for l in range(_L1)]
    wl_bd = _block_diag([wl[n] for n in range(N_DIM)])                  # (N*H, N*D)
    w_list.append(jnp.zeros((_NH, _NH), jnp.float32).at[:, :_ND].set(wl_bd))
    w_stack = jnp.stack(w_list)                                         # (L1+1, N*H, N*H)

    return w_stack, v_stack


@jax.jit
def funnet_forward(x, packed):
    w_stack, v_stack = packed
    B = x.shape[0]
    # Expand each input column to its net's hidden width (first layer has dim_in=1,
    # so it is purely elementwise).  One trivial HLO op on a (B, N*H) array.
    x_rep = jnp.repeat(x.astype(jnp.float32), DIM_HIDDEN, axis=1)       # (B, N*H)

    return pl.pallas_call(
        funnet_kernel,
        out_shape=jax.ShapeDtypeStruct((B, 1), jnp.float32),
        # Single invocation (no grid): every operand is a full-extent VMEM block.
        in_specs=[pl.BlockSpec(memory_space=pltpu.MemorySpace.VMEM)] * 3,
        out_specs=pl.BlockSpec(memory_space=pltpu.MemorySpace.VMEM),
    )(x_rep, w_stack, v_stack)


def init_params(key):
    """Deterministic SIREN-style init (uniform(-w_std, w_std)), one net per dim."""
    H, D, N, L1 = DIM_HIDDEN, DIM_OUT, N_DIM, _L1
    keys = jax.random.split(key, 6)
    # first layer: is_first -> w_std = 1 / dim_in = 1.0 (dim_in = 1)
    wf = jax.random.uniform(keys[0], (N, 1, H), jnp.float32, -1.0, 1.0)
    bf = jax.random.uniform(keys[1], (N, 1, H), jnp.float32, -1.0, 1.0)
    # other layers: w_std = sqrt(c / dim_in) / w0
    std_h = math.sqrt(C_SIREN / H) / W0
    wh = jax.random.uniform(keys[2], (N, L1, H, H), jnp.float32, -std_h, std_h)
    bh = jax.random.uniform(keys[3], (N, L1, 1, H), jnp.float32, -std_h, std_h)
    std_l = math.sqrt(C_SIREN / H) / W0
    wl = jax.random.uniform(keys[4], (N, H, D), jnp.float32, -std_l, std_l)
    bl = jax.random.uniform(keys[5], (N, 1, D), jnp.float32, -std_l, std_l)
    return wf, bf, wh, bh, wl, bl


def funnet_ref(x, params):
    """Pure-JAX reference matching the PyTorch FunNet forward (high precision dots)."""
    wf, bf, wh, bh, wl, bl = params
    prec = jax.lax.Precision.HIGHEST
    outs = []
    for i in range(N_DIM):
        xi = x[:, i:i + 1]                                       # (B, 1)
        h = jnp.sin(W0_INITIAL * (xi * wf[i] + bf[i]))           # (B, H)
        for l in range(_L1):
            h = jnp.sin(W0 * (jnp.dot(h, wh[i, l], precision=prec) + bh[i, l]))
        outs.append(jnp.dot(h, wl[i], precision=prec) + bl[i])   # (B, D_out)
    prod = outs[0]
    for o in outs[1:]:
        prod = prod * o
    return jnp.sum(prod, axis=1, keepdims=True)                  # (B, 1)


if __name__ == "__main__":
    key = jax.random.PRNGKey(0)
    kx, kp = jax.random.split(key)
    x = jax.random.uniform(kx, (BATCH, N_DIM), jnp.float32, -1.0, 1.0)
    params = init_params(kp)
    packed = pack_params(params)

    out = funnet_forward(x, packed)
    out = jax.block_until_ready(out)

    ref = funnet_ref(x, params)
    assert out.shape == (BATCH, 1), out.shape
    assert jnp.allclose(out, ref, atol=2e-3, rtol=2e-3), \
        f"max abs diff = {jnp.max(jnp.abs(out - ref))}"
    print("KERNEL_OK")
</pallas_src>

<mosaic_0001>
module attributes {stable_mosaic.version = 11 : i64} {
  func.func @funnet_kernel(%arg0: memref<8x96xf32, #tpu.memory_space<vmem>>, %arg1: memref<3x96x96xf32, #tpu.memory_space<vmem>>, %arg2: memref<5x1x96xf32, #tpu.memory_space<vmem>>, %arg3: memref<8x1xf32, #tpu.memory_space<vmem>>) attributes {dimension_semantics = [], scalar_prefetch = 0 : i64, scratch_operands = 0 : i64, tpu.core_type = #tpu.core_type<tc>} {
    %c0 = arith.constant 0 : index
    %c0_0 = arith.constant 0 : index
    %0 = vector.load %arg0[%c0, %c0_0] : memref<8x96xf32, #tpu.memory_space<vmem>>, vector<8x96xf32>
    %c0_1 = arith.constant 0 : index
    %c0_2 = arith.constant 0 : index
    %c0_3 = arith.constant 0 : index
    %1 = vector.load %arg2[%c0_1, %c0_2, %c0_3] : memref<5x1x96xf32, #tpu.memory_space<vmem>>, vector<1x1x96xf32>
    %2 = vector.shape_cast %1 : vector<1x1x96xf32> to vector<1x96xf32>
    %3 = vector.broadcast %2 : vector<1x96xf32> to vector<8x96xf32>
    %4 = arith.mulf %0, %3 : vector<8x96xf32>
    %c1 = arith.constant 1 : index
    %c0_4 = arith.constant 0 : index
    %c0_5 = arith.constant 0 : index
    %5 = vector.load %arg2[%c1, %c0_4, %c0_5] : memref<5x1x96xf32, #tpu.memory_space<vmem>>, vector<1x1x96xf32>
    %6 = vector.shape_cast %5 : vector<1x1x96xf32> to vector<1x96xf32>
    %7 = vector.broadcast %6 : vector<1x96xf32> to vector<8x96xf32>
    %8 = arith.addf %4, %7 : vector<8x96xf32>
    %cst = arith.constant 1.000000e+01 : f32
    %9 = vector.broadcast %cst : f32 to vector<8x96xf32>
    %10 = arith.mulf %9, %8 : vector<8x96xf32>
    %11 = math.sin %10 : vector<8x96xf32>
    %c0_6 = arith.constant 0 : index
    %c0_7 = arith.constant 0 : index
    %c0_8 = arith.constant 0 : index
    %12 = vector.load %arg1[%c0_6, %c0_7, %c0_8] : memref<3x96x96xf32, #tpu.memory_space<vmem>>, vector<1x96x96xf32>
    %13 = vector.shape_cast %12 : vector<1x96x96xf32> to vector<96x96xf32>
    %cst_9 = arith.constant dense<0.000000e+00> : vector<8x96xf32>
    %14 = tpu.matmul %11, %13, %cst_9 {dimension_numbers = #tpu.dot_dimension_numbers<[1], [0], [0], [1], [0, 0, 1, 1], [], []>} : vector<8x96xf32>, vector<96x96xf32>, vector<8x96xf32> -> vector<8x96xf32>
    %c2 = arith.constant 2 : index
    %c0_10 = arith.constant 0 : index
    %c0_11 = arith.constant 0 : index
    %15 = vector.load %arg2[%c2, %c0_10, %c0_11] : memref<5x1x96xf32, #tpu.memory_space<vmem>>, vector<1x1x96xf32>
    %16 = vector.shape_cast %15 : vector<1x1x96xf32> to vector<1x96xf32>
    %17 = vector.broadcast %16 : vector<1x96xf32> to vector<8x96xf32>
    %18 = arith.addf %14, %17 : vector<8x96xf32>
    %cst_12 = arith.constant 1.000000e+01 : f32
    %19 = vector.broadcast %cst_12 : f32 to vector<8x96xf32>
    %20 = arith.mulf %19, %18 : vector<8x96xf32>
    %21 = math.sin %20 : vector<8x96xf32>
    %c1_13 = arith.constant 1 : index
    %c0_14 = arith.constant 0 : index
    %c0_15 = arith.constant 0 : index
    %22 = vector.load %arg1[%c1_13, %c0_14, %c0_15] : memref<3x96x96xf32, #tpu.memory_space<vmem>>, vector<1x96x96xf32>
    %23 = vector.shape_cast %22 : vector<1x96x96xf32> to vector<96x96xf32>
    %cst_16 = arith.constant dense<0.000000e+00> : vector<8x96xf32>
    %24 = tpu.matmul %21, %23, %cst_16 {dimension_numbers = #tpu.dot_dimension_numbers<[1], [0], [0], [1], [0, 0, 1, 1], [], []>} : vector<8x96xf32>, vector<96x96xf32>, vector<8x96xf32> -> vector<8x96xf32>
    %c3 = arith.constant 3 : index
    %c0_17 = arith.constant 0 : index
    %c0_18 = arith.constant 0 : index
    %25 = vector.load %arg2[%c3, %c0_17, %c0_18] : memref<5x1x96xf32, #tpu.memory_space<vmem>>, vector<1x1x96xf32>
    %26 = vector.shape_cast %25 : vector<1x1x96xf32> to vector<1x96xf32>
    %27 = vector.broadcast %26 : vector<1x96xf32> to vector<8x96xf32>
    %28 = arith.addf %24, %27 : vector<8x96xf32>
    %cst_19 = arith.constant 1.000000e+01 : f32
    %29 = vector.broadcast %cst_19 : f32 to vector<8x96xf32>
    %30 = arith.mulf %29, %28 : vector<8x96xf32>
    %31 = math.sin %30 : vector<8x96xf32>
    %c2_20 = arith.constant 2 : index
    %c0_21 = arith.constant 0 : index
    %c0_22 = arith.constant 0 : index
    %32 = vector.load %arg1[%c2_20, %c0_21, %c0_22] : memref<3x96x96xf32, #tpu.memory_space<vmem>>, vector<1x96x96xf32>
    %33 = vector.shape_cast %32 : vector<1x96x96xf32> to vector<96x96xf32>
    %cst_23 = arith.constant dense<0.000000e+00> : vector<8x96xf32>
    %34 = tpu.matmul %31, %33, %cst_23 {dimension_numbers = #tpu.dot_dimension_numbers<[1], [0], [0], [1], [0, 0, 1, 1], [], []>} : vector<8x96xf32>, vector<96x96xf32>, vector<8x96xf32> -> vector<8x96xf32>
    %c4 = arith.constant 4 : index
    %c0_24 = arith.constant 0 : index
    %c0_25 = arith.constant 0 : index
    %35 = vector.load %arg2[%c4, %c0_24, %c0_25] : memref<5x1x96xf32, #tpu.memory_space<vmem>>, vector<1x1x96xf32>
    %36 = vector.shape_cast %35 : vector<1x1x96xf32> to vector<1x96xf32>
    %37 = vector.broadcast %36 : vector<1x96xf32> to vector<8x96xf32>
    %38 = arith.addf %34, %37 : vector<8x96xf32>
    %39 = vector.extract_strided_slice %38 {offsets = [0, 0], sizes = [8, 4], strides = [1, 1]} : vector<8x96xf32> to vector<8x4xf32>
    %40 = vector.extract_strided_slice %38 {offsets = [0, 4], sizes = [8, 4], strides = [1, 1]} : vector<8x96xf32> to vector<8x4xf32>
    %41 = arith.mulf %39, %40 : vector<8x4xf32>
    %42 = vector.extract_strided_slice %38 {offsets = [0, 8], sizes = [8, 4], strides = [1, 1]} : vector<8x96xf32> to vector<8x4xf32>
    %43 = arith.mulf %41, %42 : vector<8x4xf32>
    %cst_26 = arith.constant dense<0.000000e+00> : vector<8xf32>
    %44 = vector.multi_reduction <add>, %43, %cst_26 [1] : vector<8x4xf32> to vector<8xf32>
    %45 = vector.shape_cast %44 : vector<8xf32> to vector<8x1xf32>
    %c0_27 = arith.constant 0 : index
    %c0_28 = arith.constant 0 : index
    %46 = vector.load %arg3[%c0_27, %c0_28] : memref<8x1xf32, #tpu.memory_space<vmem>>, vector<8x1xf32>
    tpu.vector_store %arg3[%c0_27, %c0_28], %45 {strides = array<i32>} : memref<8x1xf32, #tpu.memory_space<vmem>>, vector<8x1xf32>,
    return
  }
}

</mosaic_0001>

<bundles_post_ra>
// kernel: funnet_forward.1
= control target key start
LH: loop header
LB: loop body
LE: loop exit
PB: predicated region body
PF: predicated region fallthrough
CT: control target
= control target key end

     0   :  { %8 = vsyncpa [#allocation3], 0  ;;  %s923_s12 = smov [#allocation2]   ;;  %s1113_s0 = inlined_call_operand.vmem [shape: f32[8,96], index: 0, kind: input, shape index: {}]   ;;  %s1114_s1 = inlined_call_operand.hbm [shape: f32[3,96,96], index: 1, kind: input, shape index: {}]   ;;  %s1115_s2 = inlined_call_operand.vmem [shape: f32[5,1,96], index: 2, kind: input, shape index: {}]   ;;  %s1116_s3 = inlined_call_operand.vmem [shape: f32[8,1], index: 3, kind: output, shape index: {}]  }
   0x1   :  { %s16_s13 = sshll.u32 %s923_s12, 4  ;;  %s899_s16 = scalar_lea.hbm %s1114_s1, 4608  ;;  %s17_s13 = int_to_ptr.vmem [resolvable:$true] %s16_s13 }
   0x2   :  { %p900_p0 = scmp.ne.s32.totalorder %s1114_s1, %s899_s16  ;;  %p903_p1 = scmp.lt.u32.totalorder %s899_s16, %s1114_s1 }
   0x4   :  { %p905_p2 = pnand %p903_p1, %p900_p0 }
   0x6   :  { %908 = shalt.err (!%p905_p2)
}
   0x7   :  { %s909_s21 = scalar_lea.vmem %s17_s13, 4608  ;;  %p914_p4 = scmp.lt.s32.totalorder %s17_s13, %s17_s13 }
   0x8   :  { %p910_p3 = scmp.ne.s32.totalorder %s17_s13, %s909_s21  ;;  %p915_p5 = scmp.lt.s32.totalorder %s909_s21, %s909_s21 }
   0xa   :  { %p916_p6 = por %p915_p5, %p914_p4 }
   0xc   :  { %p917_p7 = pnand %p916_p6, %p910_p3 }
   0xe   :  { %920 = shalt.err (!%p917_p7)
}
   0xf   :  { %s924_s22 = smov 128   ;;  %s925_s23 = smov 8  }
  0x10   :  { %22 = dma.hbm_to_vmem [thread:$0]  %s1114_s1, 4608, %s17_s13, [#allocation3], %s924_s22, %s924_s22, %s925_s23  }
  0x11   :  { %921 = dma.done.wait [#allocation3], 4608  }
  0x12   :  { %922 = vsyncadd [#allocation3], 4294962688  ;;  %v926_v0 = vmov 0.0|0.0   ;;  %vm927_vm0 = vmmov 0   ;;  %v928_v1 = vmov 0.0   ;;  %v151_v2 = vld [vmem:[#allocation2] sm:$0xff] }
  0x13   :  { %807 = vmatprep.subr.bf16.mxu0 %v926_v0  ;;  %750 = vmatprep.mubr.msk.f32.mxu0 %vm927_vm0, %v928_v1  ;;  %v152_v3 = vld [vmem:[#allocation2 + $0x8] sm:$0xff]  ;;  %v153_v4 = vld [vmem:[#allocation2 + $0x10] sm:$0xff]  ;;  %v154_v6 = vld [vmem:[#allocation2 + $0x18] sm:$0xff]  ;;  %v929_v37 = vmov 683565275   ;;  %vm171_vm14 = vcmask 785408  }
  0x14   :  { %825 = vmatprep.subr.bf16.mxu1 %v926_v0  ;;  %777 = vmatprep.mubr.msk.f32.mxu1 %vm927_vm0, %v928_v1  ;;  %v808_v5 = vpack.c.bf16 %v152_v3, %v151_v2  ;;  %v811_v7 = vpack.c.bf16 %v154_v6, %v153_v4  ;;  %v155_v8 = vld [vmem:[#allocation2 + $0x20] sm:$0xff]  ;;  %v156_v9 = vld [vmem:[#allocation2 + $0x28] sm:$0xff]  ;;  %v157_v16 = vld [vmem:[#allocation2 + $0x30] sm:$0xff]  ;;  %v930_v39 = vmov 2475754826   ;;  %s935_s9 = smov 124  }
  0x15   :  { %v28_v10 = vld [vmem:[%s1113_s0] sm:$0xff]  ;;  %v814_v14 = vpack.c.bf16 %v156_v9, %v155_v8  ;;  %v158_v17 = vld [vmem:[#allocation2 + $0x38] sm:$0xff]  ;;  %v160_v22 = vld [vmem:[#allocation2 + $0x48] sm:$0xff]  ;;  %v931_v41 = vmov 2131351028   ;;  %s936_s10 = smov 120  }
  0x16   :  { %809 = vmatpush3.bf16.msra.mxu0 %v808_v5  ;;  %v663_v11 = vld [vmem:[%s1115_s2] ss:$0 sm:$0xff]  ;;  %v665_v12 = vld [vmem:[%s1115_s2 + $0x1] ss:$0 sm:$0xff]  ;;  %v817_v19 = vpack.c.bf16 %v158_v17, %v157_v16  ;;  %v161_v27 = vld [vmem:[#allocation2 + $0x50] sm:$0xff] }
  0x17   :  { %810 = vmatprep.subr.bf16.mxu0 %v926_v0  ;;  %v36_v13 = vmul.f32 %v663_v11, %v28_v10  ;;  %v159_v21 = vld [vmem:[#allocation2 + $0x40] sm:$0xff]  ;;  %v162_v28 = vld [vmem:[#allocation2 + $0x58] sm:$0xff]  ;;  %v932_v43 = vmov 2102212464   ;;  %v933_v45 = vmov 920167782  }
  0x18   :  { %v820_v25 = vpack.c.bf16 %v160_v22, %v159_v21  ;;  %v823_v31 = vpack.c.bf16 %v162_v28, %v161_v27  ;;  %v934_v52 = vmov 1326507024  }
  0x19   :  { %v45_v15 = vadd.f32 %v665_v12, %v36_v13 }
  0x1a   :  { %812 = vmatpush3.bf16.msra.mxu0 %v811_v7 }
  0x1b   :  { %813 = vmatprep.subr.bf16.mxu0 %v926_v0  ;;  %v986_v18 = vmul.f32 10.0, %v45_v15 }
  0x1d   :  { %v50_v20 = vand.u32 2139095040, %v986_v18  ;;  %v47_v24 = vand.u32 2147483647, %v986_v18  ;;  %vm49_vm8 = vcmp.lt.s32.totalorder %v986_v18, 0  ;;  %vm139_vm13 = vweird.f32 %v986_v18 }
  0x1e   :  { %815 = vmatpush3.bf16.msra.mxu0 %v814_v14 }
  0x1f   :  { %816 = vmatprep.subr.bf16.mxu0 %v926_v0  ;;  %v51_v23 = vshrl.u32 %v50_v20, 23  ;;  %v54_v30 = vand.u32 8388607, %v47_v24  ;;  %vm48_vm9 = vcmp.le.f32.partialorder %v47_v24, 0.7853982 }
  0x21   :  { %v666_v26 = vadd.s32 4294967169, %v51_v23  ;;  %v55_v34 = vor.u32 8388608, %v54_v30 }
  0x22   :  { %818 = vmatpush3.bf16.msra.mxu0 %v817_v19 }
  0x23   :  { %819 = vmatprep.subr.bf16.mxu0 %v926_v0  ;;  %v57_v29 = vadd.s32 1, %v666_v26  ;;  %v95_v54 = vshll.u32 %v55_v34, 8 }
  0x25   :  { %vm58_vm1 = vcmp.gt.s32.totalorder %v57_v29, 0 }
  0x26   :  { %821 = vmatpush3.bf16.msra.mxu0 %v820_v25  ;;  %v59_v32 = vsel %vm58_vm1, %v57_v29, 0 }
  0x27   :  { %822 = vmatprep.subr.bf16.mxu0 %v926_v0  ;;  %v61_v33 = vand.u32 31, %v59_v32  ;;  %v60_v35 = vshrl.u32 %v59_v32, 5 }
  0x29   :  { %v62_v36 = vsub.s32 32, %v61_v33  ;;  %v64_v38 = vshll.u32 %v929_v37, %v61_v33  ;;  %v67_v40 = vshll.u32 %v930_v39, %v61_v33  ;;  %v70_v42 = vshll.u32 %v931_v41, %v61_v33 }
  0x2a   :  { %824 = vmatpush3.bf16.msra.mxu0 %v823_v31  ;;  %v73_v44 = vshll.u32 %v932_v43, %v61_v33  ;;  %v76_v46 = vshll.u32 %v933_v45, %v61_v33  ;;  %vm79_vm2 = vcmp.lt.s32.totalorder %v60_v35, 1  ;;  %vm82_vm3 = vcmp.lt.s32.totalorder %v60_v35, 4 }
  0x2b   :  { %843 = vmatprep.subr.bf16.mxu0 %v926_v0  ;;  %v63_v47 = vshrl.u32 %v929_v37, %v62_v36  ;;  %v65_v48 = vshrl.u32 %v930_v39, %v62_v36  ;;  %v68_v49 = vshrl.u32 %v931_v41, %v62_v36  ;;  %v71_v50 = vshrl.u32 %v932_v43, %v62_v36 }
  0x2c   :  { %v74_v51 = vshrl.u32 %v933_v45, %v62_v36  ;;  %v77_v53 = vshrl.u32 %v934_v52, %v62_v36  ;;  %vm80_vm4 = vcmp.lt.s32.totalorder %v60_v35, 2  ;;  %vm81_vm5 = vcmp.lt.s32.totalorder %v60_v35, 3 }
  0x2d   :  { %v66_v55 = vor.u32 %v65_v48, %v64_v38  ;;  %v69_v56 = vor.u32 %v68_v49, %v67_v40  ;;  %v72_v57 = vor.u32 %v71_v50, %v70_v42 }
  0x2e   :  { %v75_v58 = vor.u32 %v74_v51, %v73_v44  ;;  %v78_v59 = vor.u32 %v77_v53, %v76_v46 }
  0x2f   :  { %v83_v60 = vsel %vm79_vm2, %v63_v47, %v66_v55  ;;  %v84_v61 = vsel %vm82_vm3, %v72_v57, 2102212464  ;;  %v87_v62 = vsel %vm79_vm2, %v66_v55, %v69_v56  ;;  %v91_v63 = vsel %vm79_vm2, %v69_v56, %v72_v57 }
  0x30   :  { %v85_v2 = vsel %vm81_vm5, %v69_v56, %v84_v61  ;;  %v88_v3 = vsel %vm82_vm3, %v75_v58, 920167782  ;;  %v92_v4 = vsel %vm82_vm3, %v78_v59, 1326507024 }
  0x31   :  { %v89_v5 = vsel %vm81_vm5, %v72_v57, %v88_v3  ;;  %v93_v6 = vsel %vm81_vm5, %v75_v58, %v92_v4  ;;  %v86_v7 = vsel %vm80_vm4, %v83_v60, %v85_v2  ;;  %v353_v3 = vld [vmem:[#allocation2 + $0x70] sm:$0xff]  ;;  %v354_v4 = vld [vmem:[#allocation2 + $0x78] sm:$0xff] }
  0x32   :  { %v90_v8 = vsel %vm80_vm4, %v87_v62, %v89_v5  ;;  %v94_v9 = vsel %vm80_vm4, %v91_v63, %v93_v6  ;;  %v102_v14 = vmul.u32 %v95_v54, %v86_v7  ;;  %v351_v62 = vld [vmem:[#allocation2 + $0x60] sm:$0xff]  ;;  %v352_v63 = vld [vmem:[#allocation2 + $0x68] sm:$0xff]  ;;  %v829_v5 = vpack.c.bf16 %v354_v4, %v353_v3 }
  0x33   :  { %v1007_v10 = vmul.u32.u64.low %v95_v54, %v94_v9  ;;  %v1008_v11 = vmul.u32.u64.high %v95_v54, %v94_v9, %v1007_v10  ;;  %v1010_v12 = vmul.u32.u64.low %v95_v54, %v90_v8  ;;  %v1011_v13 = vmul.u32.u64.high %v95_v54, %v90_v8, %v1010_v12  ;;  %v356_v6 = vld [vmem:[#allocation2 + $0x88] sm:$0xff]  ;;  %v357_v8 = vld [vmem:[#allocation2 + $0x90] sm:$0xff]  ;;  %v358_v9 = vld [vmem:[#allocation2 + $0x98] sm:$0xff] }
  0x34   :  { %v826_v2 = vpack.c.bf16 %v352_v63, %v351_v62  ;;  %v835_v10 = vpack.c.bf16 %v358_v9, %v357_v8 }
  0x35   :  { %vm104_vm6 = vc.u32 %v1008_v11, %v1010_v12  ;;  %v105_v15 = vadd.s32 1, %v1011_v13  ;;  %v103_v28 = vadd.s32 %v1010_v12, %v1008_v11  ;;  %v360_v11 = vld [vmem:[#allocation2 + $0xa8] sm:$0xff] }
  0x36   :  { %827 = vmatpush3.bf16.msra.mxu1 %v826_v2 }
  0x37   :  { %v106_v16 = vsel %vm104_vm6, %v105_v15, %v1011_v13  ;;  %828 = vmatprep.subr.bf16.mxu1 %v926_v0  ;;  %v361_v13 = vld [vmem:[#allocation2 + $0xb0] sm:$0xff] }
  0x38   :  { %v107_v17 = vadd.s32 %v106_v16, %v102_v14  ;;  %v362_v14 = vld [vmem:[#allocation2 + $0xb8] sm:$0xff]  ;;  %v671_v16 = vld [vmem:[%s1115_s2 + $0x2] ss:$0 sm:$0xff] }
  0x39   :  { %v841_v15 = vpack.c.bf16 %v362_v14, %v361_v13 }
  0x3a   :  { %v108_v19 = vadd.s32 536870912, %v107_v17  ;;  %830 = vmatpush3.bf16.msra.mxu1 %v829_v5 }
  0x3b   :  { %831 = vmatprep.subr.bf16.mxu1 %v926_v0 }
  0x3c   :  { %v109_v20 = vshrl.u32 %v108_v19, 30 }
  0x3e   :  { %v110_v21 = vshll.u32 %v109_v20, 30  ;;  %v133_v44 = vsub.s32 4, %v109_v20 }
  0x40   :  { %v111_v22 = vsub.s32 %v107_v17, %v110_v21  ;;  %v134_v48 = vsel %vm49_vm8, %v133_v44, %v109_v20 }
  0x41   :  { %v136_v51 = vsel %vm48_vm9, 0, %v134_v48 }
  0x42   :  { %v113_v23 = vsub.s32 0, %v111_v22  ;;  %v140_v53 = vadd.s32 3, %v136_v51 }
  0x44   :  { %v667_v25 = vmin.u32 %v113_v23, %v111_v22  ;;  %v141_v54 = vand.u32 3, %v140_v53 }
  0x46   :  { %v115_v26 = vclz %v667_v25  ;;  %vm146_vm10 = vcmp.eq.s32.totalorder %v141_v54, 2  ;;  %vm143_vm11 = vcmp.eq.s32.totalorder %v141_v54, 0  ;;  %vm142_vm12 = vcmp.lt.s32.totalorder %v141_v54, 2 }
  0x48   :  { %v668_v27 = vadd.s32 4294967294, %v115_v26 }
  0x4a   :  { %vm669_vm7 = vcmp.lt.s32.totalorder %v668_v27, 0 }
  0x4b   :  { %v118_v29 = vsel %vm669_vm7, 0, %v668_v27 }
  0x4c   :  { %v119_v30 = vsub.s32 32, %v118_v29  ;;  %v120_v31 = vshll.u32 %v111_v22, %v118_v29  ;;  %v123_v32 = vsub.s32 4294967266, %v118_v29 }
  0x4e   :  { %v121_v33 = vshrl.u32 %v103_v28, %v119_v30  ;;  %v124_v34 = vadd.s32 127, %v123_v32 }
  0x50   :  { %v122_v35 = vor.u32 %v121_v33, %v120_v31  ;;  %v125_v36 = vshll.u32 %v124_v34, 23 }
  0x52   :  { %v126_v38 = vor.u32 4788187, %v125_v36  ;;  %v129_v40 = vcvt.s32.f32 %v122_v35 }
  0x54   :  { %v127_v42 = vand.u32 2147483647, %v126_v38 }
  0x56   :  { %v130_v46 = vmul.f32 %v129_v40, %v127_v42 }
  0x58   :  { %v131_v47 = vxor.u32 2147483648, %v130_v46 }
  0x5a   :  { %v132_v49 = vsel %vm49_vm8, %v131_v47, %v130_v46 }
  0x5b   :  { %v135_v50 = vsel %vm48_vm9, %v986_v18, %v132_v49  ;;  %v355_v18 = vld [vmem:[#allocation2 + $0x80] sm:$0xff] }
  0x5c   :  { %887 = vcosq.f32 %v135_v50  ;;  %v832_v7 = vpack.c.bf16 %v356_v6, %v355_v18 }
  0x5d   :  { %889 = vsinq.f32 %v135_v50 }
  0x5e   :  { %833 = vmatpush3.bf16.msra.mxu1 %v832_v7 }
  0x5f   :  { %834 = vmatprep.subr.bf16.mxu1 %v926_v0 }
  0x62   :  { %836 = vmatpush3.bf16.msra.mxu1 %v835_v10 }
  0x63   :  { %837 = vmatprep.subr.bf16.mxu1 %v926_v0 }
  0x66   :  { %v888_v55 = vpop.eup %887 }
  0x67   :  { %v890_v56 = vpop.eup %889  ;;  %v147_v57 = vxor.u32 2147483648, %v888_v55 }
  0x68   :  { %v144_v58 = vxor.u32 2147483648, %v890_v56 }
  0x69   :  { %v148_v24 = vsel %vm146_vm10, %v147_v57, %v890_v56 }
  0x6a   :  { %v145_v59 = vsel %vm143_vm11, %v888_v55, %v144_v58 }
  0x6b   :  { %v149_v60 = vsel %vm142_vm12, %v145_v59, %v148_v24 }
  0x6c   :  { %v150_v61 = vsel %vm139_vm13, nan, %v149_v60 }
  0x6d   :  { %751 = vmatmul.mubr.msk.f32.vlgmr.msra.gmra.mrb[0].mxu0 %vm171_vm14, %v150_v61 }
  0x6e   :  { %804 = vmatprep.mubr.msk.f32.mxu0 %vm927_vm0, %v928_v1  ;;  %v359_v1 = vld [vmem:[#allocation2 + $0xa0] sm:$0xff] }
  0x6f   :  { %v838_v12 = vpack.c.bf16 %v360_v11, %v359_v1 }
  0x71   :  { %839 = vmatpush3.bf16.msra.mxu1 %v838_v12 }
  0x72   :  { %840 = vmatprep.subr.bf16.mxu1 %v926_v0 }
  0x75   :  { %842 = vmatpush3.bf16.msra.mxu1 %v841_v15 }
 0x140   :  { %v241_v17 = vpop.f32.mrb[0].mxu0 }
 0x141   :  { %v242_v19 = vadd.f32 %v671_v16, %v241_v17  ;;  %v752_v20 = vpop.f32.mrb[1].mxu0 }
 0x143   :  { %v1033_v21 = vmul.f32 10.0, %v242_v19 }
 0x145   :  { %v249_v22 = vand.u32 2139095040, %v1033_v21  ;;  %v246_v27 = vand.u32 2147483647, %v1033_v21  ;;  %vm248_vm6 = vcmp.lt.s32.totalorder %v1033_v21, 0  ;;  %vm338_vm11 = vweird.f32 %v1033_v21 }
 0x147   :  { %v250_v23 = vshrl.u32 %v249_v22, 23  ;;  %v253_v30 = vand.u32 8388607, %v246_v27  ;;  %vm247_vm7 = vcmp.le.f32.partialorder %v246_v27, 0.7853982 }
 0x149   :  { %v673_v25 = vadd.s32 4294967169, %v250_v23  ;;  %v254_v48 = vor.u32 8388608, %v253_v30 }
 0x14b   :  { %v256_v26 = vadd.s32 1, %v673_v25  ;;  %v294_v62 = vshll.u32 %v254_v48, 8 }
 0x14d   :  { %vm257_vm15 = vcmp.gt.s32.totalorder %v256_v26, 0 }
 0x14e   :  { %v258_v28 = vsel %vm257_vm15, %v256_v26, 0 }
 0x14f   :  { %v260_v29 = vand.u32 31, %v258_v28  ;;  %v259_v32 = vshrl.u32 %v258_v28, 5 }
 0x151   :  { %v261_v31 = vsub.s32 32, %v260_v29  ;;  %v263_v33 = vshll.u32 %v929_v37, %v260_v29  ;;  %v266_v34 = vshll.u32 %v930_v39, %v260_v29  ;;  %v269_v38 = vshll.u32 %v931_v41, %v260_v29 }
 0x152   :  { %v272_v42 = vshll.u32 %v932_v43, %v260_v29  ;;  %v275_v46 = vshll.u32 %v933_v45, %v260_v29  ;;  %vm278_vm0 = vcmp.lt.s32.totalorder %v259_v32, 1  ;;  %vm281_vm1 = vcmp.lt.s32.totalorder %v259_v32, 4 }
 0x153   :  { %v264_v35 = vshrl.u32 %v930_v39, %v261_v31  ;;  %v267_v36 = vshrl.u32 %v931_v41, %v261_v31  ;;  %v270_v40 = vshrl.u32 %v932_v43, %v261_v31  ;;  %v273_v44 = vshrl.u32 %v933_v45, %v261_v31 }
 0x154   :  { %v276_v47 = vshrl.u32 %v934_v52, %v261_v31  ;;  %v262_v58 = vshrl.u32 %v929_v37, %v261_v31  ;;  %vm280_vm2 = vcmp.lt.s32.totalorder %v259_v32, 3  ;;  %vm279_vm3 = vcmp.lt.s32.totalorder %v259_v32, 2 }
 0x155   :  { %v265_v49 = vor.u32 %v264_v35, %v263_v33  ;;  %v268_v50 = vor.u32 %v267_v36, %v266_v34  ;;  %v271_v51 = vor.u32 %v270_v40, %v269_v38  ;;  %v274_v53 = vor.u32 %v273_v44, %v272_v42 }
 0x156   :  { %v277_v54 = vor.u32 %v276_v47, %v275_v46 }
 0x157   :  { %v283_v55 = vsel %vm281_vm1, %v271_v51, 2102212464  ;;  %v286_v56 = vsel %vm278_vm0, %v265_v49, %v268_v50  ;;  %v290_v57 = vsel %vm278_vm0, %v268_v50, %v271_v51  ;;  %v287_v24 = vsel %vm281_vm1, %v274_v53, 920167782 }
 0x158   :  { %v291_v59 = vsel %vm281_vm1, %v277_v54, 1326507024  ;;  %v288_v60 = vsel %vm280_vm2, %v271_v51, %v287_v24  ;;  %v282_v63 = vsel %vm278_vm0, %v262_v58, %v265_v49  ;;  %v284_v2 = vsel %vm280_vm2, %v268_v50, %v283_v55  ;;  %v550_v58 = vld [vmem:[#allocation2 + $0xc0] sm:$0xff]  ;;  %v551_v24 = vld [vmem:[#allocation2 + $0xc8] sm:$0xff] }
 0x159   :  { %v292_v61 = vsel %vm280_vm2, %v274_v53, %v291_v59  ;;  %v289_v3 = vsel %vm279_vm3, %v286_v56, %v288_v60  ;;  %v285_v8 = vsel %vm279_vm3, %v282_v63, %v284_v2  ;;  %v844_v59 = vpack.c.bf16 %v551_v24, %v550_v58  ;;  %v552_v60 = vld [vmem:[#allocation2 + $0xd0] sm:$0xff]  ;;  %v554_v63 = vld [vmem:[#allocation2 + $0xe0] sm:$0xff]  ;;  %v555_v2 = vld [vmem:[#allocation2 + $0xe8] sm:$0xff] }
 0x15a   :  { %v293_v4 = vsel %vm279_vm3, %v290_v57, %v292_v61  ;;  %v1053_v6 = vmul.u32.u64.low %v294_v62, %v289_v3  ;;  %v1054_v7 = vmul.u32.u64.high %v294_v62, %v289_v3, %v1053_v6  ;;  %v301_v10 = vmul.u32 %v294_v62, %v285_v8  ;;  %v553_v61 = vld [vmem:[#allocation2 + $0xd8] sm:$0xff]  ;;  %v560_v8 = vld [vmem:[#allocation2 + $0x110] sm:$0xff] }
 0x15b   :  { %v1050_v5 = vmul.u32.u64.low %v294_v62, %v293_v4  ;;  %v1051_v18 = vmul.u32.u64.high %v294_v62, %v293_v4, %v1050_v5  ;;  %845 = vmatpush3.bf16.msra.mxu0 %v844_v59  ;;  %v847_v62 = vpack.c.bf16 %v553_v61, %v552_v60  ;;  %v850_v3 = vpack.c.bf16 %v555_v2, %v554_v63  ;;  %v557_v4 = vld [vmem:[#allocation2 + $0xf8] sm:$0xff] }
 0x15c   :  { %v304_v9 = vadd.s32 1, %v1054_v7  ;;  %846 = vmatprep.subr.bf16.mxu0 %v926_v0 }
 0x15d   :  { %vm303_vm4 = vc.u32 %v1051_v18, %v1053_v6  ;;  %v302_v23 = vadd.s32 %v1053_v6, %v1051_v18  ;;  %v558_v18 = vld [vmem:[#allocation2 + $0x100] sm:$0xff]  ;;  %v559_v6 = vld [vmem:[#allocation2 + $0x108] sm:$0xff] }
 0x15e   :  { %v305_v1 = vsel %vm303_vm4, %v304_v9, %v1054_v7  ;;  %v856_v7 = vpack.c.bf16 %v559_v6, %v558_v18  ;;  %v561_v9 = vld [vmem:[#allocation2 + $0x118] sm:$0xff] }
 0x15f   :  { %v306_v11 = vadd.s32 %v305_v1, %v301_v10  ;;  %848 = vmatpush3.bf16.msra.mxu0 %v847_v62  ;;  %v859_v10 = vpack.c.bf16 %v561_v9, %v560_v8  ;;  %v678_v1 = vld [vmem:[%s1115_s2 + $0x3] ss:$0 sm:$0xff] }
 0x160   :  { %849 = vmatprep.subr.bf16.mxu0 %v926_v0 }
 0x161   :  { %v307_v12 = vadd.s32 536870912, %v306_v11 }
 0x163   :  { %v308_v13 = vshrl.u32 %v307_v12, 30  ;;  %851 = vmatpush3.bf16.msra.mxu0 %v850_v3 }
 0x164   :  { %852 = vmatprep.subr.bf16.mxu0 %v926_v0 }
 0x165   :  { %v309_v14 = vshll.u32 %v308_v13, 30  ;;  %v332_v38 = vsub.s32 4, %v308_v13 }
 0x167   :  { %v310_v15 = vsub.s32 %v306_v11, %v309_v14  ;;  %v333_v44 = vsel %vm248_vm6, %v332_v38, %v308_v13 }
 0x168   :  { %v335_v47 = vsel %vm247_vm7, 0, %v333_v44 }
 0x169   :  { %v312_v16 = vsub.s32 0, %v310_v15  ;;  %v339_v48 = vadd.s32 3, %v335_v47 }
 0x16b   :  { %v674_v17 = vmin.u32 %v312_v16, %v310_v15  ;;  %v340_v49 = vand.u32 3, %v339_v48 }
 0x16d   :  { %v314_v19 = vclz %v674_v17  ;;  %vm345_vm8 = vcmp.eq.s32.totalorder %v340_v49, 2  ;;  %vm342_vm9 = vcmp.eq.s32.totalorder %v340_v49, 0  ;;  %vm341_vm10 = vcmp.lt.s32.totalorder %v340_v49, 2 }
 0x16f   :  { %v675_v20 = vadd.s32 4294967294, %v314_v19 }
 0x171   :  { %vm676_vm5 = vcmp.lt.s32.totalorder %v675_v20, 0 }
 0x172   :  { %v317_v22 = vsel %vm676_vm5, 0, %v675_v20 }
 0x173   :  { %v318_v25 = vsub.s32 32, %v317_v22  ;;  %v322_v26 = vsub.s32 4294967266, %v317_v22  ;;  %v319_v28 = vshll.u32 %v310_v15, %v317_v22 }
 0x175   :  { %v320_v29 = vshrl.u32 %v302_v23, %v318_v25  ;;  %v323_v30 = vadd.s32 127, %v322_v26 }
 0x177   :  { %v321_v31 = vor.u32 %v320_v29, %v319_v28  ;;  %v324_v32 = vshll.u32 %v323_v30, 23 }
 0x179   :  { %v325_v33 = vor.u32 4788187, %v324_v32  ;;  %v328_v35 = vcvt.s32.f32 %v321_v31 }
 0x17b   :  { %v326_v34 = vand.u32 2147483647, %v325_v33 }
 0x17d   :  { %v329_v36 = vmul.f32 %v328_v35, %v326_v34 }
 0x17f   :  { %v330_v40 = vxor.u32 2147483648, %v329_v36 }
 0x181   :  { %v331_v42 = vsel %vm248_vm6, %v330_v40, %v329_v36 }
 0x182   :  { %v334_v46 = vsel %vm247_vm7, %v1033_v21, %v331_v42  ;;  %v556_v21 = vld [vmem:[#allocation2 + $0xf0] sm:$0xff] }
 0x183   :  { %891 = vcosq.f32 %v334_v46  ;;  %v853_v5 = vpack.c.bf16 %v557_v4, %v556_v21 }
 0x184   :  { %893 = vsinq.f32 %v334_v46 }
 0x185   :  { %854 = vmatpush3.bf16.msra.mxu0 %v853_v5 }
 0x186   :  { %855 = vmatprep.subr.bf16.mxu0 %v926_v0 }
 0x189   :  { %857 = vmatpush3.bf16.msra.mxu0 %v856_v7 }
 0x18a   :  { %858 = vmatprep.subr.bf16.mxu0 %v926_v0 }
 0x18d   :  { %v892_v50 = vpop.eup %891  ;;  %860 = vmatpush3.bf16.msra.mxu0 %v859_v10 }
 0x18e   :  { %v894_v51 = vpop.eup %893  ;;  %v346_v53 = vxor.u32 2147483648, %v892_v50 }
 0x18f   :  { %v343_v54 = vxor.u32 2147483648, %v894_v51 }
 0x190   :  { %v347_v55 = vsel %vm345_vm8, %v346_v53, %v894_v51 }
 0x191   :  { %v344_v56 = vsel %vm342_vm9, %v892_v50, %v343_v54 }
 0x192   :  { %v348_v27 = vsel %vm341_vm10, %v344_v56, %v347_v55  ;;  %vm652_vm10 = vcmask 31744  }
 0x193   :  { %v349_v57 = vsel %vm338_vm11, nan, %v348_v27  ;;  %vm656_vm11 = vcmask 7168  }
 0x194   :  { %778 = vmatmul.mubr.msk.f32.vlgmr.msra.gmra.mrb[0].mxu1 %vm171_vm14, %v349_v57 }
 0x267   :  { %v440_v11 = vpop.f32.mrb[0].mxu1 }
 0x268   :  { %v441_v12 = vadd.f32 %v678_v1, %v440_v11  ;;  %v779_v13 = vpop.f32.mrb[1].mxu1 }
 0x26a   :  { %v1074_v14 = vmul.f32 10.0, %v441_v12 }
 0x26c   :  { %v448_v15 = vand.u32 2139095040, %v1074_v14  ;;  %v445_v20 = vand.u32 2147483647, %v1074_v14  ;;  %vm447_vm4 = vcmp.lt.s32.totalorder %v1074_v14, 0  ;;  %vm537_vm9 = vweird.f32 %v1074_v14 }
 0x26e   :  { %v449_v16 = vshrl.u32 %v448_v15, 23  ;;  %v452_v23 = vand.u32 8388607, %v445_v20  ;;  %vm446_vm5 = vcmp.le.f32.partialorder %v445_v20, 0.7853982 }
 0x270   :  { %v680_v17 = vadd.s32 4294967169, %v449_v16  ;;  %v453_v40 = vor.u32 8388608, %v452_v23 }
 0x272   :  { %v455_v19 = vadd.s32 1, %v680_v17 }
 0x274   :  { %vm456_vm12 = vcmp.gt.s32.totalorder %v455_v19, 0 }
 0x275   :  { %v457_v22 = vsel %vm456_vm12, %v455_v19, 0 }
 0x276   :  { %v459_v0 = vand.u32 31, %v457_v22  ;;  %v458_v26 = vshrl.u32 %v457_v22, 5 }
 0x278   :  { %v460_v25 = vsub.s32 32, %v459_v0  ;;  %v462_v28 = vshll.u32 %v929_v37, %v459_v0  ;;  %v465_v29 = vshll.u32 %v930_v39, %v459_v0  ;;  %v468_v32 = vshll.u32 %v931_v41, %v459_v0 }
 0x279   :  { %v471_v34 = vshll.u32 %v932_v43, %v459_v0  ;;  %v474_v36 = vshll.u32 %v933_v45, %v459_v0  ;;  %vm477_vm13 = vcmp.lt.s32.totalorder %v458_v26, 1  ;;  %vm480_vm15 = vcmp.lt.s32.totalorder %v458_v26, 4 }
 0x27a   :  { %v463_v30 = vshrl.u32 %v930_v39, %v460_v25  ;;  %v466_v31 = vshrl.u32 %v931_v41, %v460_v25  ;;  %v469_v33 = vshrl.u32 %v932_v43, %v460_v25  ;;  %v472_v35 = vshrl.u32 %v933_v45, %v460_v25 }
 0x27b   :  { %v475_v38 = vshrl.u32 %v934_v52, %v460_v25  ;;  %v461_v50 = vshrl.u32 %v929_v37, %v460_v25  ;;  %vm479_vm0 = vcmp.lt.s32.totalorder %v458_v26, 3  ;;  %vm478_vm1 = vcmp.lt.s32.totalorder %v458_v26, 2 }
 0x27c   :  { %v464_v42 = vor.u32 %v463_v30, %v462_v28  ;;  %v467_v44 = vor.u32 %v466_v31, %v465_v29  ;;  %v470_v46 = vor.u32 %v469_v33, %v468_v32  ;;  %v473_v47 = vor.u32 %v472_v35, %v471_v34 }
 0x27d   :  { %v476_v39 = vor.u32 %v475_v38, %v474_v36  ;;  %v493_v52 = vshll.u32 %v453_v40, 8 }
 0x27e   :  { %v482_v48 = vsel %vm480_vm15, %v470_v46, 2102212464  ;;  %v485_v41 = vsel %vm477_vm13, %v464_v42, %v467_v44  ;;  %v489_v49 = vsel %vm477_vm13, %v467_v44, %v470_v46  ;;  %v486_v43 = vsel %vm480_vm15, %v473_v47, 920167782 }
 0x27f   :  { %v490_v51 = vsel %vm480_vm15, %v476_v39, 1326507024  ;;  %v487_v45 = vsel %vm479_vm0, %v470_v46, %v486_v43  ;;  %v481_v54 = vsel %vm477_vm13, %v461_v50, %v464_v42  ;;  %v483_v55 = vsel %vm479_vm0, %v467_v44, %v482_v48  ;;  %v685_v44 = vld [vmem:[%s1115_s2 + $0x4] ss:$0 sm:$0xff] }
 0x280   :  { %v491_v53 = vsel %vm479_vm0, %v473_v47, %v490_v51  ;;  %v488_v56 = vsel %vm478_vm1, %v485_v41, %v487_v45  ;;  %v484_v60 = vsel %vm478_vm1, %v481_v54, %v483_v55 }
 0x281   :  { %v492_v27 = vsel %vm478_vm1, %v489_v49, %v491_v53  ;;  %v1094_v24 = vmul.u32.u64.low %v493_v52, %v488_v56  ;;  %v1095_v59 = vmul.u32.u64.high %v493_v52, %v488_v56, %v1094_v24  ;;  %v500_v61 = vmul.u32 %v493_v52, %v484_v60 }
 0x282   :  { %v1091_v57 = vmul.u32.u64.low %v493_v52, %v492_v27  ;;  %v1092_v58 = vmul.u32.u64.high %v493_v52, %v492_v27, %v1091_v57 }
 0x283   :  { %v503_v37 = vadd.s32 1, %v1095_v59 }
 0x284   :  { %vm502_vm2 = vc.u32 %v1092_v58, %v1094_v24  ;;  %v501_v9 = vadd.s32 %v1094_v24, %v1092_v58 }
 0x285   :  { %v504_v62 = vsel %vm502_vm2, %v503_v37, %v1095_v59 }
 0x286   :  { %v505_v63 = vadd.s32 %v504_v62, %v500_v61 }
 0x288   :  { %v506_v2 = vadd.s32 536870912, %v505_v63 }
 0x28a   :  { %v507_v3 = vshrl.u32 %v506_v2, 30 }
 0x28c   :  { %v508_v21 = vshll.u32 %v507_v3, 30  ;;  %v531_v23 = vsub.s32 4, %v507_v3 }
 0x28e   :  { %v509_v4 = vsub.s32 %v505_v63, %v508_v21  ;;  %v532_v28 = vsel %vm447_vm4, %v531_v23, %v507_v3 }
 0x28f   :  { %v534_v30 = vsel %vm446_vm5, 0, %v532_v28 }
 0x290   :  { %v511_v5 = vsub.s32 0, %v509_v4  ;;  %v538_v31 = vadd.s32 3, %v534_v30 }
 0x292   :  { %v681_v18 = vmin.u32 %v511_v5, %v509_v4  ;;  %v539_v32 = vand.u32 3, %v538_v31 }
 0x294   :  { %v513_v6 = vclz %v681_v18  ;;  %vm544_vm6 = vcmp.eq.s32.totalorder %v539_v32, 2  ;;  %vm541_vm7 = vcmp.eq.s32.totalorder %v539_v32, 0  ;;  %vm540_vm8 = vcmp.lt.s32.totalorder %v539_v32, 2 }
 0x296   :  { %v682_v7 = vadd.s32 4294967294, %v513_v6 }
 0x298   :  { %vm683_vm3 = vcmp.lt.s32.totalorder %v682_v7, 0 }
 0x299   :  { %v516_v8 = vsel %vm683_vm3, 0, %v682_v7 }
 0x29a   :  { %v517_v10 = vsub.s32 32, %v516_v8  ;;  %v521_v1 = vsub.s32 4294967266, %v516_v8  ;;  %v518_v11 = vshll.u32 %v509_v4, %v516_v8 }
 0x29c   :  { %v519_v12 = vshrl.u32 %v501_v9, %v517_v10  ;;  %v522_v13 = vadd.s32 127, %v521_v1 }
 0x29e   :  { %v520_v15 = vor.u32 %v519_v12, %v518_v11  ;;  %v523_v16 = vshll.u32 %v522_v13, 23 }
 0x2a0   :  { %v524_v17 = vor.u32 4788187, %v523_v16  ;;  %v527_v22 = vcvt.s32.f32 %v520_v15 }
 0x2a2   :  { %v525_v19 = vand.u32 2147483647, %v524_v17 }
 0x2a4   :  { %v528_v0 = vmul.f32 %v527_v22, %v525_v19 }
 0x2a6   :  { %v529_v25 = vxor.u32 2147483648, %v528_v0 }
 0x2a8   :  { %v530_v26 = vsel %vm447_vm4, %v529_v25, %v528_v0 }
 0x2a9   :  { %v533_v29 = vsel %vm446_vm5, %v1074_v14, %v530_v26 }
 0x2aa   :  { %895 = vcosq.f32 %v533_v29 }
 0x2ab   :  { %897 = vsinq.f32 %v533_v29 }
 0x2b4   :  { %v896_v33 = vpop.eup %895 }
 0x2b5   :  { %v898_v34 = vpop.eup %897  ;;  %v545_v35 = vxor.u32 2147483648, %v896_v33 }
 0x2b6   :  { %v542_v36 = vxor.u32 2147483648, %v898_v34 }
 0x2b7   :  { %v546_v38 = vsel %vm544_vm6, %v545_v35, %v898_v34 }
 0x2b8   :  { %v543_v40 = vsel %vm541_vm7, %v896_v33, %v542_v36 }
 0x2b9   :  { %v547_v20 = vsel %vm540_vm8, %v543_v40, %v546_v38 }
 0x2ba   :  { %v548_v42 = vsel %vm537_vm9, nan, %v547_v20 }
 0x2bb   :  { %805 = vmatmul.mubr.msk.f32.vlgmr.msra.gmra.mrb[2].mxu0 %vm171_vm14, %v548_v42 }
 0x38e   :  { %v639_v46 = vpop.f32.mrb[2].mxu0 }
 0x38f   :  { %v640_v47 = vadd.f32 %v685_v44, %v639_v46  ;;  %v806_v39 = vpop.f32.mrb[3].mxu0 }
 0x391   :  { %644 = vrot.lane.b32.xlu0 %v640_v47, %s935_s9 }
 0x395   :  { %648 = vrot.lane.b32.xlu0 %v640_v47, %s936_s10 }
 0x403   :  { %v645_v48 = vpop.permute.xlu0 %644 }
 0x404   :  { %v647_v41 = vmul.f32 %v645_v48, %v640_v47 }
 0x407   :  { %v649_v49 = vpop.permute.xlu0 %648 }
 0x408   :  { %v651_v14 = vmul.f32 %v649_v49, %v647_v41 }
 0x40a   :  { %v653_v50 = vsel %vm652_vm10, %v651_v14, 0.0 }
 0x40b   :  { %654 = vadd.xlane.f32.xlu1 %v653_v50 }
 0x498   :  { %v655_v43 = vpop.xlane.xlu1 %654 }
 0x499   :  { %657 = vst.msk [vmem:[%s1116_s3] sm:$0xff] %vm656_vm11, %v655_v43 }
 0x49a   :  { %662 = vsyncpa [#allocation3], 1 }

</bundles_post_ra>
